<compile_context>
chip_gen: v7x
topology: tpu7x:2x2x1
jax: 0.10.0
libtpu: 0.0.40
codegen_flags: <defaults>
</compile_context>

<pallas_src>
import functools

import jax
import jax.numpy as jnp
from jax import lax
from jax.experimental import pallas as pl
from jax.experimental.pallas import tpu as pltpu

_C = 16  # the PyTorch module hardcodes Conv3d(16, 1, 1) and Conv3d(1, 16, 1)


def _channel_attention_kernel(x_ref, w1_ref, w2_ref, o_ref, sum_acc, max_acc,
                              *, S, TS, TB, BCH, LACC, needs_mask):
    # x_ref   : (TB, C, TS)   batch-block x spatial tile (C sublanes, S lanes)
    # w1_ref  : (1, C)        fc1 weight row (Conv3d(16,1,1) squeezed)
    # w2_ref  : (1, C)        fc2 weight row (Conv3d(1,16,1) squeezed)
    # o_ref   : (TB, 1, C)    sigmoid attention weights (written on last S tile)
    # sum_acc / max_acc : (TB, C, LACC) f32 resident per-lane partials (VMEM)
    C = _C
    k = pl.program_id(1)
    last_k = pl.num_programs(1) - 1

    n_rb = TB // BCH          # row-blocks per grid step   (static)
    nlc = TS // LACC          # lane-chunks per spatial tile (static)
    lane_aligned = (LACC % 128 == 0)

    @pl.when(k == 0)
    def _init():
        sum_acc[...] = jnp.zeros_like(sum_acc)
        max_acc[...] = jnp.full_like(max_acc, -jnp.inf)

    def reduce_tile(masked):
        # Accumulate this (TB, C, TS) tile into the resident per-lane partials.
        def row_block(rb, outer_carry):
            b0 = rb * BCH
            rows = pl.ds(b0, BCH)

            def lane_chunk(j, carry):
                c_sum, c_max = carry
                start = j * LACC
                if lane_aligned and not isinstance(start, int):
                    start = pl.multiple_of(start, 128)
                ch = x_ref[rows, :, pl.ds(start, LACC)].astype(jnp.float32)
                if masked:
                    # Ragged tail of the last spatial tile: mask padded lanes.
                    col = lax.broadcasted_iota(jnp.int32, ch.shape, 2)
                    valid = (k * TS + start + col) < S
                    c_sum = c_sum + jnp.where(valid, ch, 0.0)
                    c_max = jnp.maximum(c_max, jnp.where(valid, ch, -jnp.inf))
                else:
                    c_sum = c_sum + ch
                    c_max = jnp.maximum(c_max, ch)
                return c_sum, c_max

            init = (jnp.zeros((BCH, C, LACC), jnp.float32),
                    jnp.full((BCH, C, LACC), -jnp.inf, jnp.float32))
            if nlc == 1:
                c_sum, c_max = lane_chunk(0, init)
            else:
                c_sum, c_max = lax.fori_loop(0, nlc, lane_chunk, init,
                                             unroll=(nlc <= 4))

            # Single read-modify-write of the resident accumulators per row-block.
            sum_acc[rows, :, :] = sum_acc[rows, :, :] + c_sum
            max_acc[rows, :, :] = jnp.maximum(max_acc[rows, :, :], c_max)
            return outer_carry

        if n_rb == 1:
            row_block(0, 0)
        else:
            lax.fori_loop(0, n_rb, row_block, 0)

    if needs_mask:
        # Mask path only on the last S tile; steady state stays mask-free.
        @pl.when(k == last_k)
        def _tail():
            reduce_tile(True)

        @pl.when(k != last_k)
        def _steady():
            reduce_tile(False)
    else:
        reduce_tile(False)

    @pl.when(k == last_k)
    def _finalize():
        # Single cross-lane reduce of the per-lane partials (XLU, once per block).
        avg = jnp.sum(sum_acc[...], axis=-1) * (1.0 / S)        # (TB, C) adaptive avg
        mx = jnp.max(max_acc[...], axis=-1)                     # (TB, C) adaptive max
        w1r = w1_ref[...]                                       # (1, C)
        w2r = w2_ref[...]                                       # (1, C)
        # fc1 (16->1) + ReLU: degenerate matmul -> VPU multiply + tiny reduce.
        h_avg = jnp.maximum(jnp.sum(avg * w1r, axis=-1, keepdims=True), 0.0)  # (TB,1)
        h_max = jnp.maximum(jnp.sum(mx * w1r, axis=-1, keepdims=True), 0.0)   # (TB,1)
        # fc2 (1->16) is linear with no bias, so it factors over the sum.
        out = (h_avg + h_max) * w2r                             # (TB, C)
        o_ref[...] = jax.nn.sigmoid(out)[:, None, :].astype(o_ref.dtype)


def _pick_spatial_tile(S, max_ts):
    """Spatial tile TS: all of S, or a lane-aligned tile (prefer one dividing S)."""
    if S <= max_ts:
        return S, False
    aligned = max(128, (max_ts // 128) * 128)
    if S % aligned == 0:
        return aligned, False
    # Prefer a not-too-small 128-aligned tile that divides S exactly (no tail mask).
    floor = max(128, aligned // 4)
    for cand in range(aligned, floor - 1, -128):
        if S % cand == 0:
            return cand, False
    return aligned, True


def _pick_lane_chunk(TS, cap=512):
    """Lane-chunk width LACC (divides TS) so register-carried partials stay small."""
    if TS <= cap + cap // 4:
        return TS
    for cand in range(cap, 63, -1):
        if TS % cand == 0:
            return cand
    return TS  # pathological (near-prime) spatial size; correctness over perf


def _largest_divisor_at_most(n, cap):
    for d in range(min(n, cap), 0, -1):
        if n % d == 0:
            return d
    return 1


def channel_attention(x, w1, w2, *, max_ts=32768, block_target_bytes=2 * 1024 * 1024):
    """x : (N, C, D, H, W) NCDHW like PyTorch (C must be 16 for this module).
    w1: C-element fc1 weight (e.g. Conv3d(16,1,1,bias=False).weight, any layout)
    w2: C-element fc2 weight (e.g. Conv3d(1,16,1,bias=False).weight, any layout)
    Returns (N, C, 1, 1, 1) attention weights, matching the PyTorch module."""
    N, C, D, H, W = x.shape
    assert C == _C, "ChannelAttention hardcodes 16 channels (Conv3d(16,1,1)/Conv3d(1,16,1))"
    S = D * H * W
    itemsize = jnp.dtype(x.dtype).itemsize

    # Free view of NCDHW -- no transpose, no extra HBM pass, no dtype cast.
    x_k = x.reshape(N, C, S)
    w1r = jnp.asarray(w1, jnp.float32).reshape(1, C)
    w2r = jnp.asarray(w2, jnp.float32).reshape(1, C)

    # Spatial tile: element budget is scaled so bytes/tile stay constant for
    # narrow dtypes (bf16 tiles carry 2x the lanes of f32 tiles).
    max_ts_eff = max(128, (max_ts * 4) // max(itemsize, 1))
    TS, needs_mask = _pick_spatial_tile(S, max_ts_eff)
    assert TS == S or TS % 128 == 0
    KS = -(-S // TS)

    # Batch tiling: only when the whole spatial extent fits in one tile, so every
    # batch row is reduced start-to-finish within a single grid step.
    if KS == 1:
        TB = max(1, block_target_bytes // (C * TS * itemsize))
        TB = min(TB, N, 512)
    else:
        TB = 1
    NB = -(-N // TB)

    # Inner chunking: keep each register-carried partial to a handful of vregs.
    LACC = _pick_lane_chunk(TS)
    max_bch = max(1, 8192 // (C * LACC))
    BCH = _largest_divisor_at_most(TB, max_bch)
    assert TS % LACC == 0 and TB % BCH == 0

    kernel = functools.partial(
        _channel_attention_kernel,
        S=S, TS=TS, TB=TB, BCH=BCH, LACC=LACC, needs_mask=needs_mask)

    # VMEM limit from the actual buffer math (double-buffered blocks + scratch +
    # slack) so the enlarged tiles stay comfortably inside v7x's 64 MiB VMEM.
    x_block_bytes = TB * C * TS * itemsize
    o_block_bytes = TB * C * itemsize
    w_bytes = 2 * C * 4
    scratch_bytes = 2 * TB * C * LACC * 4
    vmem_limit = 2 * (x_block_bytes + o_block_bytes + w_bytes) + scratch_bytes + (4 << 20)
    vmem_limit = int(min(max(vmem_limit, 16 << 20), 64 << 20))

    out = pl.pallas_call(
        kernel,
        out_shape=jax.ShapeDtypeStruct((N, 1, C), x.dtype),
        grid=(NB, KS),
        in_specs=[
            pl.BlockSpec((TB, C, TS), lambda n, k: (n, 0, k)),
            pl.BlockSpec((1, C), lambda n, k: (0, 0)),
            pl.BlockSpec((1, C), lambda n, k: (0, 0)),
        ],
        # Output block is independent of k -> resident across the S axis,
        # written once (last S tile) per batch block.
        out_specs=pl.BlockSpec((TB, 1, C), lambda n, k: (n, 0, 0)),
        scratch_shapes=[
            pltpu.VMEM((TB, C, LACC), jnp.float32),   # running per-lane sums
            pltpu.VMEM((TB, C, LACC), jnp.float32),   # running per-lane maxes
        ],
        compiler_params=pltpu.CompilerParams(
            dimension_semantics=("parallel", "arbitrary"),
            vmem_limit_bytes=vmem_limit,
        ),
    )(x_k, w1r, w2r)
    return out.reshape(N, C, 1, 1, 1)


def channel_attention_ref(x, w1, w2):
    # pure-JAX reference of the PyTorch forward
    avg = jnp.mean(x, axis=(2, 3, 4))          # (N, C)
    mx = jnp.max(x, axis=(2, 3, 4))            # (N, C)
    w1r = jnp.reshape(w1, (1, -1))
    w2r = jnp.reshape(w2, (1, -1))

    def fc(v):
        h = jnp.maximum(jnp.sum(v * w1r, axis=-1, keepdims=True), 0.0)   # fc1 + relu
        return h * w2r                                                   # fc2

    out = jax.nn.sigmoid(fc(avg) + fc(mx))     # (N, C)
    return out.reshape(out.shape[0], out.shape[1], 1, 1, 1)


if __name__ == "__main__":
    key = jax.random.PRNGKey(0)
    k1, k2, kx1, kx2, kx3 = jax.random.split(key, 5)

    C = 16  # the module hardcodes Conv3d(16, 1, 1) / Conv3d(1, 16, 1)
    w1 = 0.1 * jax.random.normal(k1, (1, C), dtype=jnp.float32)   # fc1: 16 -> 1
    w2 = 0.1 * jax.random.normal(k2, (C, 1), dtype=jnp.float32)   # fc2: 1 -> 16

    # Case 1: small volume -> batch-tiled single-step path (TB = N, KS = 1).
    x1 = jax.random.normal(kx1, (4, C, 4, 8, 4), dtype=jnp.float32)       # S = 128
    o1 = jax.block_until_ready(channel_attention(x1, w1, w2))
    r1 = channel_attention_ref(x1, w1, w2)
    assert o1.shape == (4, C, 1, 1, 1)
    assert jnp.allclose(o1, r1, atol=1e-5, rtol=1e-5), "mismatch (batch-tiled path)"

    # Case 2: ragged spatial tiling -> running sum/max with tail mask (KS = 3).
    x2 = jax.random.normal(kx2, (2, C, 4, 8, 11), dtype=jnp.float32)      # S = 352
    o2 = jax.block_until_ready(channel_attention(x2, w1, w2, max_ts=128))
    r2 = channel_attention_ref(x2, w1, w2)
    assert o2.shape == (2, C, 1, 1, 1)
    assert jnp.allclose(o2, r2, atol=1e-5, rtol=1e-5), "mismatch (ragged tile path)"

    # Case 3: larger aligned volume -> register-carried lane-chunk loop (nlc > 1).
    x3 = jax.random.normal(kx3, (2, C, 8, 16, 32), dtype=jnp.float32)     # S = 4096
    o3 = jax.block_until_ready(channel_attention(x3, w1, w2))
    r3 = channel_attention_ref(x3, w1, w2)
    assert o3.shape == (2, C, 1, 1, 1)
    assert jnp.allclose(o3, r3, atol=1e-5, rtol=1e-5), "mismatch (lane-chunk path)"

    print("KERNEL_OK")
</pallas_src>

<mosaic_0001>
module attributes {stable_mosaic.version = 11 : i64} {
  func.func @_channel_attention_kernel(%arg0: i32, %arg1: i32, %arg2: memref<4x16x128xf32, #tpu.memory_space<vmem>>, %arg3: memref<1x16xf32, #tpu.memory_space<vmem>>, %arg4: memref<1x16xf32, #tpu.memory_space<vmem>>, %arg5: memref<4x1x16xf32, #tpu.memory_space<vmem>>, %arg6: memref<4x16x128xf32, #tpu.memory_space<vmem>>, %arg7: memref<4x16x128xf32, #tpu.memory_space<vmem>>) attributes {dimension_semantics = [#tpu.dimension_semantics<parallel>, #tpu.dimension_semantics<arbitrary>], iteration_bounds = array<i64: 1, 1>, scalar_prefetch = 0 : i64, scratch_operands = 2 : i64, tpu.core_type = #tpu.core_type<tc>, window_params = [{transform_indices = @transform_0, window_bounds = array<i64: 4, 16, 128>}, {pipeline_mode = #tpu.pipeline_mode<synchronous>, transform_indices = @transform_1, window_bounds = array<i64: 1, 16>}, {pipeline_mode = #tpu.pipeline_mode<synchronous>, transform_indices = @transform_2, window_bounds = array<i64: 1, 16>}, {transform_indices = @transform_3, window_bounds = array<i64: 4, 1, 16>}]} {
    %c0_i32 = arith.constant 0 : i32
    %0 = arith.cmpi eq, %arg1, %c0_i32 : i32
    %1 = arith.extui %0 : i1 to i32
    %c0_i32_0 = arith.constant 0 : i32
    %2 = arith.cmpi ne, %1, %c0_i32_0 : i32
    scf.if %2 {
      %cst_18 = arith.constant 0.000000e+00 : f32
      %17 = vector.broadcast %cst_18 : f32 to vector<4x16x128xf32>
      %c0_19 = arith.constant 0 : index
      %c0_20 = arith.constant 0 : index
      %c0_21 = arith.constant 0 : index
      %18 = vector.load %arg6[%c0_19, %c0_20, %c0_21] : memref<4x16x128xf32, #tpu.memory_space<vmem>>, vector<4x16x128xf32>
      tpu.vector_store %arg6[%c0_19, %c0_20, %c0_21], %17 {strides = array<i32>} : memref<4x16x128xf32, #tpu.memory_space<vmem>>, vector<4x16x128xf32>,
      %cst_22 = arith.constant 0xFF800000 : f32
      %19 = vector.broadcast %cst_22 : f32 to vector<4x16x128xf32>
      %c0_23 = arith.constant 0 : index
      %c0_24 = arith.constant 0 : index
      %c0_25 = arith.constant 0 : index
      %20 = vector.load %arg7[%c0_23, %c0_24, %c0_25] : memref<4x16x128xf32, #tpu.memory_space<vmem>>, vector<4x16x128xf32>
      tpu.vector_store %arg7[%c0_23, %c0_24, %c0_25], %19 {strides = array<i32>} : memref<4x16x128xf32, #tpu.memory_space<vmem>>, vector<4x16x128xf32>,
    } else {
    }
    %cst = arith.constant 0.000000e+00 : f32
    %3 = vector.broadcast %cst : f32 to vector<4x16x128xf32>
    %cst_1 = arith.constant 0xFF800000 : f32
    %4 = vector.broadcast %cst_1 : f32 to vector<4x16x128xf32>
    %c0 = arith.constant 0 : index
    %c0_2 = arith.constant 0 : index
    %c0_3 = arith.constant 0 : index
    %5 = vector.load %arg2[%c0, %c0_2, %c0_3] : memref<4x16x128xf32, #tpu.memory_space<vmem>>, vector<4x16x128xf32>
    %6 = arith.addf %3, %5 : vector<4x16x128xf32>
    %7 = arith.maximumf %4, %5 : vector<4x16x128xf32>
    %c0_4 = arith.constant 0 : index
    %c0_5 = arith.constant 0 : index
    %c0_6 = arith.constant 0 : index
    %8 = vector.load %arg6[%c0_4, %c0_5, %c0_6] : memref<4x16x128xf32, #tpu.memory_space<vmem>>, vector<4x16x128xf32>
    %9 = arith.addf %8, %6 : vector<4x16x128xf32>
    %c0_7 = arith.constant 0 : index
    %c0_8 = arith.constant 0 : index
    %c0_9 = arith.constant 0 : index
    %10 = vector.load %arg6[%c0_7, %c0_8, %c0_9] : memref<4x16x128xf32, #tpu.memory_space<vmem>>, vector<4x16x128xf32>
    tpu.vector_store %arg6[%c0_7, %c0_8, %c0_9], %9 {strides = array<i32>} : memref<4x16x128xf32, #tpu.memory_space<vmem>>, vector<4x16x128xf32>,
    %c0_10 = arith.constant 0 : index
    %c0_11 = arith.constant 0 : index
    %c0_12 = arith.constant 0 : index
    %11 = vector.load %arg7[%c0_10, %c0_11, %c0_12] : memref<4x16x128xf32, #tpu.memory_space<vmem>>, vector<4x16x128xf32>
    %12 = arith.maximumf %11, %7 : vector<4x16x128xf32>
    %c0_13 = arith.constant 0 : index
    %c0_14 = arith.constant 0 : index
    %c0_15 = arith.constant 0 : index
    %13 = vector.load %arg7[%c0_13, %c0_14, %c0_15] : memref<4x16x128xf32, #tpu.memory_space<vmem>>, vector<4x16x128xf32>
    tpu.vector_store %arg7[%c0_13, %c0_14, %c0_15], %12 {strides = array<i32>} : memref<4x16x128xf32, #tpu.memory_space<vmem>>, vector<4x16x128xf32>,
    %c0_i32_16 = arith.constant 0 : i32
    %14 = arith.cmpi eq, %arg1, %c0_i32_16 : i32
    %15 = arith.extui %14 : i1 to i32
    %c0_i32_17 = arith.constant 0 : i32
    %16 = arith.cmpi ne, %15, %c0_i32_17 : i32
    scf.if %16 {
      %c0_18 = arith.constant 0 : index
      %c0_19 = arith.constant 0 : index
      %c0_20 = arith.constant 0 : index
      %17 = vector.load %arg6[%c0_18, %c0_19, %c0_20] : memref<4x16x128xf32, #tpu.memory_space<vmem>>, vector<4x16x128xf32>
      %cst_21 = arith.constant dense<0.000000e+00> : vector<4x16xf32>
      %18 = vector.multi_reduction <add>, %17, %cst_21 [2] : vector<4x16x128xf32> to vector<4x16xf32>
      %cst_22 = arith.constant 7.812500e-03 : f32
      %19 = vector.broadcast %cst_22 : f32 to vector<4x16xf32>
      %20 = arith.mulf %18, %19 : vector<4x16xf32>
      %c0_23 = arith.constant 0 : index
      %c0_24 = arith.constant 0 : index
      %c0_25 = arith.constant 0 : index
      %21 = vector.load %arg7[%c0_23, %c0_24, %c0_25] : memref<4x16x128xf32, #tpu.memory_space<vmem>>, vector<4x16x128xf32>
      %cst_26 = arith.constant dense<0xFF800000> : vector<4x16xf32>
      %22 = vector.multi_reduction <maximumf>, %21, %cst_26 [2] : vector<4x16x128xf32> to vector<4x16xf32>
      %c0_27 = arith.constant 0 : index
      %c0_28 = arith.constant 0 : index
      %23 = vector.load %arg3[%c0_27, %c0_28] : memref<1x16xf32, #tpu.memory_space<vmem>>, vector<1x16xf32>
      %c0_29 = arith.constant 0 : index
      %c0_30 = arith.constant 0 : index
      %24 = vector.load %arg4[%c0_29, %c0_30] : memref<1x16xf32, #tpu.memory_space<vmem>>, vector<1x16xf32>
      %25 = vector.broadcast %23 : vector<1x16xf32> to vector<4x16xf32>
      %26 = arith.mulf %20, %25 : vector<4x16xf32>
      %cst_31 = arith.constant dense<0.000000e+00> : vector<4xf32>
      %27 = vector.multi_reduction <add>, %26, %cst_31 [1] : vector<4x16xf32> to vector<4xf32>
      %28 = vector.shape_cast %27 : vector<4xf32> to vector<4x1xf32>
      %cst_32 = arith.constant 0.000000e+00 : f32
      %29 = vector.broadcast %cst_32 : f32 to vector<4x1xf32>
      %30 = arith.maximumf %28, %29 : vector<4x1xf32>
      %31 = vector.broadcast %23 : vector<1x16xf32> to vector<4x16xf32>
      %32 = arith.mulf %22, %31 : vector<4x16xf32>
      %cst_33 = arith.constant dense<0.000000e+00> : vector<4xf32>
      %33 = vector.multi_reduction <add>, %32, %cst_33 [1] : vector<4x16xf32> to vector<4xf32>
      %34 = vector.shape_cast %33 : vector<4xf32> to vector<4x1xf32>
      %cst_34 = arith.constant 0.000000e+00 : f32
      %35 = vector.broadcast %cst_34 : f32 to vector<4x1xf32>
      %36 = arith.maximumf %34, %35 : vector<4x1xf32>
      %37 = arith.addf %30, %36 : vector<4x1xf32>
      %38 = vector.broadcast %37 : vector<4x1xf32> to vector<4x16xf32>
      %39 = vector.broadcast %24 : vector<1x16xf32> to vector<4x16xf32>
      %40 = arith.mulf %38, %39 : vector<4x16xf32>
      %41 = arith.negf %40 : vector<4x16xf32>
      %42 = math.exp %41 : vector<4x16xf32>
      %cst_35 = arith.constant 1.000000e+00 : f32
      %43 = vector.broadcast %cst_35 : f32 to vector<4x16xf32>
      %44 = arith.addf %43, %42 : vector<4x16xf32>
      %45 = arith.divf %43, %44 : vector<4x16xf32>
      %46 = vector.shape_cast %45 : vector<4x16xf32> to vector<4x1x16xf32>
      %c0_36 = arith.constant 0 : index
      %c0_37 = arith.constant 0 : index
      %c0_38 = arith.constant 0 : index
      %47 = vector.load %arg5[%c0_36, %c0_37, %c0_38] : memref<4x1x16xf32, #tpu.memory_space<vmem>>, vector<4x1x16xf32>
      tpu.vector_store %arg5[%c0_36, %c0_37, %c0_38], %46 {strides = array<i32>} : memref<4x1x16xf32, #tpu.memory_space<vmem>>, vector<4x1x16xf32>,
    } else {
    }
    return
  }
  func.func @transform_0(%arg0: i32, %arg1: i32) -> (i32, i32, i32) {
    %c0_i32 = arith.constant 0 : i32
    %c0_i32_0 = arith.constant 0 : i32
    return %arg0, %c0_i32, %arg1 : i32, i32, i32
  }
  func.func @transform_1(%arg0: i32, %arg1: i32) -> (i32, i32) {
    %c0_i32 = arith.constant 0 : i32
    %c0_i32_0 = arith.constant 0 : i32
    %c0_i32_1 = arith.constant 0 : i32
    return %c0_i32, %c0_i32_0 : i32, i32
  }
  func.func @transform_2(%arg0: i32, %arg1: i32) -> (i32, i32) {
    %c0_i32 = arith.constant 0 : i32
    %c0_i32_0 = arith.constant 0 : i32
    %c0_i32_1 = arith.constant 0 : i32
    return %c0_i32, %c0_i32_0 : i32, i32
  }
  func.func @transform_3(%arg0: i32, %arg1: i32) -> (i32, i32, i32) {
    %c0_i32 = arith.constant 0 : i32
    %c0_i32_0 = arith.constant 0 : i32
    %c0_i32_1 = arith.constant 0 : i32
    return %arg0, %c0_i32, %c0_i32_0 : i32, i32, i32
  }
}

</mosaic_0001>

<bundles_post_ra>
// kernel: tpu_custom_call.1
= control target key start
LH: loop header
LB: loop body
LE: loop exit
PB: predicated region body
PF: predicated region fallthrough
CT: control target
= control target key end

     0   :  { %8 = vsyncpa [#allocation5], 0  ;;  %s571_s0 = inlined_call_operand.hbm [shape: f32[4,16,128], index: 0, kind: input, shape index: {}]   ;;  %s572_s1 = inlined_call_operand.vmem [shape: f32[1,16], index: 1, kind: input, shape index: {}]   ;;  %s573_s2 = inlined_call_operand.vmem [shape: f32[1,16], index: 2, kind: input, shape index: {}]   ;;  %s574_s3 = inlined_call_operand.hbm [shape: f32[4,1,16], index: 3, kind: output, shape index: {}]  }
   0x1   :  { %9 = vsyncpa [#allocation6], 0  ;;  %s494_s12 = smov [#allocation4]   ;;  %s446_s16 = scalar_lea.hbm %s571_s0, 1024 }
   0x2   :  { %s15_s13 = sshll.u32 %s494_s12, 4  ;;  %p447_p0 = scmp.ne.s32.totalorder %s571_s0, %s446_s16  ;;  %s16_s13 = int_to_ptr.vmem [resolvable:$true] %s15_s13 }
   0x3   :  { %p450_p1 = scmp.lt.u32.totalorder %s446_s16, %s571_s0 }
   0x5   :  { %p452_p2 = pnand %p450_p1, %p447_p0 }
   0x7   :  { %455 = shalt.err (!%p452_p2)
}
   0x8   :  { %s456_s21 = scalar_lea.vmem %s16_s13, 1024  ;;  %p461_p4 = scmp.lt.s32.totalorder %s16_s13, %s16_s13 }
   0x9   :  { %p457_p3 = scmp.ne.s32.totalorder %s16_s13, %s456_s21  ;;  %p462_p5 = scmp.lt.s32.totalorder %s456_s21, %s456_s21 }
   0xb   :  { %p463_p6 = por %p462_p5, %p461_p4 }
   0xd   :  { %p464_p7 = pnand %p463_p6, %p457_p3 }
   0xf   :  { %467 = shalt.err (!%p464_p7)
}
  0x10   :  { %s495_s22 = smov 128   ;;  %s496_s23 = smov 8  }
  0x11   :  { %21 = dma.hbm_to_vmem [thread:$0]  %s571_s0, 1024, %s16_s13, [#allocation5], %s495_s22, %s495_s22, %s496_s23  }
  0x12   :  { %490 = dma.done.wait [#allocation5], 1024  }
  0x13   :  { %491 = vsyncadd [#allocation5], 4294966272  ;;  %v51_v0 = vld [vmem:[#allocation4 + $0x10] sm:$0xff]  ;;  %v49_v1 = vld [vmem:[#allocation4] sm:$0xff]  ;;  %v497_v9 = vmov 0   ;;  %v228_v58 = vlaneseq  ;;  %vm239_vm0 = vcmask 130112  }
  0x14   :  { %128 = vadd.xlane.f32.xlu1 %v51_v0  ;;  %124 = vadd.xlane.f32.xlu0 %v49_v1  ;;  %v52_v2 = vld [vmem:[#allocation4 + $0x18] sm:$0xff]  ;;  %v50_v3 = vld [vmem:[#allocation4 + $0x8] sm:$0xff]  ;;  %v53_v5 = vld [vmem:[#allocation4 + $0x20] sm:$0xff]  ;;  %vm268_vm1 = vcmask 1041409   ;;  %vm272_vm2 = vcmask 1043459   ;;  %vm270_vm3 = vcmask 1042434  }
  0x15   :  { %v54_v4 = vld [vmem:[#allocation4 + $0x28] sm:$0xff]  ;;  %v56_v6 = vld [vmem:[#allocation4 + $0x38] sm:$0xff]  ;;  %v55_v7 = vld [vmem:[#allocation4 + $0x30] sm:$0xff]  ;;  %441 = vset.pattern.permute.xlu0 %v497_v9  ;;  %440 = vset.pattern.permute.xlu1 %v497_v9  ;;  %v229_v61 = vand.u32 127, %v228_v58  ;;  %v537_v63 = vshrl.u32 %v228_v58, 7  ;;  %vm275_vm4 = vcmask 125952  }
  0x16   :  { %v429_v8 = vld [vmem:[%s572_s1] ss:$0 sm:$0xff]  ;;  %vm407_vm5 = vcmask 122880   ;;  %s499_s28 = smov [#allocation7]  }
  0x17   :  { %s417_s29 = sshll.u32 %s499_s28, 4  ;;  %s418_s29 = int_to_ptr.vmem [resolvable:$true] %s417_s29 }
  0x18   :  { %130 = vadd.xlane.f32.xlu1 %v52_v2  ;;  %126 = vadd.xlane.f32.xlu0 %v50_v3  ;;  %p473_p9 = scmp.lt.s32.totalorder %s418_s29, %s418_s29 }
  0x1c   :  { %134 = vadd.xlane.f32.xlu1 %v54_v4  ;;  %132 = vadd.xlane.f32.xlu0 %v53_v5 }
  0x20   :  { %138 = vadd.xlane.f32.xlu1 %v56_v6  ;;  %136 = vadd.xlane.f32.xlu0 %v55_v7 }
  0x24   :  { %158 = vmax.xlane.f32.xlu1 %v50_v3  ;;  %156 = vmax.xlane.f32.xlu0 %v49_v1 }
  0x28   :  { %162 = vmax.xlane.f32.xlu1 %v52_v2  ;;  %160 = vmax.xlane.f32.xlu0 %v51_v0  ;;  %v234_v0 = vadd.s32 4294967288, %v229_v61 }
  0x2a   :  { %v237_v3 = vsub.s32 %v234_v0, %v537_v63 }
  0x2c   :  { %166 = vmax.xlane.f32.xlu1 %v54_v4  ;;  %164 = vmax.xlane.f32.xlu0 %v53_v5  ;;  %v232_v4 = vsub.s32 %v229_v61, %v537_v63 }
  0x30   :  { %170 = vmax.xlane.f32.xlu1 %v56_v6  ;;  %168 = vmax.xlane.f32.xlu0 %v55_v7 }
  0x41   :  { %184 = vbcast.lane.b32.xlu1 %v429_v8, 264 }
  0x46   :  { %180 = vbcast.lane.b32.xlu0 %v429_v8, 256 }
  0xa1   :  { %v129_v10 = vpop.xlane.xlu1 %128  ;;  %v125_v11 = vpop.xlane.xlu0 %124 }
  0xa2   :  { %v142_v34 = vmul.f32 0.0078125, %v129_v10  ;;  %v140_v35 = vmul.f32 0.0078125, %v125_v11 }
  0xa5   :  { %v131_v12 = vpop.xlane.xlu1 %130  ;;  %v127_v13 = vpop.xlane.xlu0 %126 }
  0xa6   :  { %v141_v38 = vmul.f32 0.0078125, %v127_v13  ;;  %v143_v42 = vmul.f32 0.0078125, %v131_v12 }
  0xa9   :  { %v135_v14 = vpop.xlane.xlu1 %134  ;;  %v133_v15 = vpop.xlane.xlu0 %132 }
  0xaa   :  { %v145_v39 = vmul.f32 0.0078125, %v135_v14  ;;  %v144_v46 = vmul.f32 0.0078125, %v133_v15 }
  0xad   :  { %v139_v16 = vpop.xlane.xlu1 %138  ;;  %v137_v17 = vpop.xlane.xlu0 %136 }
  0xae   :  { %v147_v43 = vmul.f32 0.0078125, %v139_v16  ;;  %v146_v49 = vmul.f32 0.0078125, %v137_v17 }
  0xb1   :  { %v159_v18 = vpop.xlane.xlu1 %158  ;;  %v157_v19 = vpop.xlane.xlu0 %156 }
  0xb5   :  { %v163_v20 = vpop.xlane.xlu1 %162  ;;  %v161_v21 = vpop.xlane.xlu0 %160 }
  0xb9   :  { %v167_v22 = vpop.xlane.xlu1 %166  ;;  %v165_v23 = vpop.xlane.xlu0 %164 }
  0xbd   :  { %v171_v24 = vpop.xlane.xlu1 %170  ;;  %v169_v25 = vpop.xlane.xlu0 %168 }
  0xc1   :  { %v185_v26 = vpop.permute.xlu1 %184  ;;  %v181_v27 = vpop.permute.xlu0 %180 }
  0xc2   :  { %v281_v28 = vmul.f32 %v185_v26, %v159_v18  ;;  %v280_v29 = vmul.f32 %v181_v27, %v157_v19  ;;  %v283_v30 = vmul.f32 %v185_v26, %v163_v20  ;;  %v282_v31 = vmul.f32 %v181_v27, %v161_v21 }
  0xc3   :  { %v285_v32 = vmul.f32 %v185_v26, %v167_v22  ;;  %v284_v33 = vmul.f32 %v181_v27, %v165_v23  ;;  %v190_v36 = vmul.f32 %v181_v27, %v142_v34  ;;  %v188_v37 = vmul.f32 %v181_v27, %v140_v35 }
  0xc4   :  { %300 = vperm.xlu0 %441, %v281_v28   ;;  %297 = vperm.xlu1 %440, %v280_v29   ;;  %v193_v40 = vmul.f32 %v185_v26, %v145_v39  ;;  %v189_v41 = vmul.f32 %v185_v26, %v141_v38  ;;  %v195_v44 = vmul.f32 %v185_v26, %v147_v43 }
  0xc5   :  { %v191_v45 = vmul.f32 %v185_v26, %v143_v42  ;;  %v287_v47 = vmul.f32 %v185_v26, %v171_v24  ;;  %v192_v48 = vmul.f32 %v181_v27, %v144_v46  ;;  %v194_v50 = vmul.f32 %v181_v27, %v146_v49  ;;  %v430_v46 = vld [vmem:[%s573_s2] ss:$0 sm:$0xff]  ;;  %s468_s2 = scalar_lea.vmem %s418_s29, 64 }
  0xc6   :  { %v286_v51 = vmul.f32 %v181_v27, %v169_v25  ;;  %p469_p8 = scmp.ne.s32.totalorder %s418_s29, %s468_s2  ;;  %p474_p10 = scmp.lt.s32.totalorder %s468_s2, %s468_s2 }
  0xc8   :  { %306 = vperm.xlu0 %441, %v283_v30   ;;  %303 = vperm.xlu1 %440, %v282_v31   ;;  %p475_p11 = por %p474_p10, %p473_p9 }
  0xca   :  { %p476_p12 = pnand %p475_p11, %p469_p8 }
  0xcc   :  { %312 = vperm.xlu0 %441, %v285_v32   ;;  %309 = vperm.xlu1 %440, %v284_v33  }
  0xd0   :  { %211 = vperm.xlu0 %441, %v190_v36   ;;  %205 = vperm.xlu1 %440, %v188_v37  }
  0xd4   :  { %220 = vperm.xlu0 %441, %v193_v40   ;;  %208 = vperm.xlu1 %440, %v189_v41  }
  0xd8   :  { %226 = vperm.xlu0 %441, %v195_v44   ;;  %214 = vperm.xlu1 %440, %v191_v45  }
  0xdc   :  { %318 = vperm.xlu0 %441, %v287_v47   ;;  %217 = vperm.xlu1 %440, %v192_v48  }
  0xe0   :  { %223 = vperm.xlu1 %440, %v194_v50  }
  0xe4   :  { %315 = vperm.xlu1 %440, %v286_v51  }
 0x143   :  { %v298_v52 = vpop.permute.xlu1 %297  ;;  %v301_v53 = vpop.permute.xlu0 %300 }
 0x144   :  { %v323_v16 = vrot.slane %v298_v52, %v232_v4  ;;  %v327_v21 = vrot.slane %v301_v53, %v237_v3  ;;  %v498_v52 = vmov 1966171168  }
 0x145   :  { %v380_v53 = vunpack.c.l.s4 %v498_v52 }
 0x146   :  { %v328_v33 = vsel %vm239_vm0, %v327_v21, %v323_v16 }
 0x147   :  { %v304_v54 = vpop.permute.xlu1 %303  ;;  %v307_v55 = vpop.permute.xlu0 %306 }
 0x148   :  { %v332_v12 = vrot.slane %v304_v54, %v232_v4  ;;  %v336_v13 = vrot.slane %v307_v55, %v237_v3  ;;  %v381_v54 = vunpack.c.0.s8 %v380_v53 }
 0x14a   :  { %v337_v27 = vsel %vm239_vm0, %v336_v13, %v332_v12  ;;  %v384_v55 = vsub.s32 %v381_v54, %v537_v63 }
 0x14b   :  { %v310_v56 = vpop.permute.xlu1 %309  ;;  %v313_v57 = vpop.permute.xlu0 %312  ;;  %v356_v37 = vsel %vm268_vm1, %v337_v27, %v328_v33 }
 0x14c   :  { %v341_v17 = vrot.slane %v310_v56, %v232_v4  ;;  %v345_v18 = vrot.slane %v313_v57, %v237_v3 }
 0x14e   :  { %v346_v30 = vsel %vm239_vm0, %v345_v18, %v341_v17 }
 0x14f   :  { %v206_v59 = vpop.permute.xlu1 %205  ;;  %v212_v60 = vpop.permute.xlu0 %211  ;;  %v357_v39 = vsel %vm270_vm3, %v346_v30, %v356_v37 }
 0x150   :  { %v244_v8 = vrot.slane %v212_v60, %v232_v4  ;;  %v233_v14 = vrot.slane %v206_v59, %v232_v4 }
 0x153   :  { %v209_v62 = vpop.permute.xlu1 %208  ;;  %v221_v1 = vpop.permute.xlu0 %220 }
 0x154   :  { %v238_v9 = vrot.slane %v209_v62, %v237_v3  ;;  %v257_v11 = vrot.slane %v221_v1, %v237_v3 }
 0x156   :  { %v240_v22 = vsel %vm239_vm0, %v238_v9, %v233_v14 }
 0x157   :  { %v215_v2 = vpop.permute.xlu1 %214  ;;  %v227_v6 = vpop.permute.xlu0 %226 }
 0x158   :  { %v248_v5 = vrot.slane %v215_v2, %v237_v3  ;;  %v266_v23 = vrot.slane %v227_v6, %v237_v3 }
 0x15a   :  { %v249_v15 = vsel %vm239_vm0, %v248_v5, %v244_v8 }
 0x15b   :  { %v218_v7 = vpop.permute.xlu1 %217  ;;  %v319_v25 = vpop.permute.xlu0 %318  ;;  %v269_v26 = vsel %vm268_vm1, %v249_v15, %v240_v22 }
 0x15c   :  { %v253_v10 = vrot.slane %v218_v7, %v232_v4  ;;  %v354_v34 = vrot.slane %v319_v25, %v237_v3 }
 0x15e   :  { %v258_v19 = vsel %vm239_vm0, %v257_v11, %v253_v10 }
 0x15f   :  { %v224_v20 = vpop.permute.xlu1 %223  ;;  %v271_v29 = vsel %vm270_vm3, %v258_v19, %v269_v26 }
 0x160   :  { %v262_v24 = vrot.slane %v224_v20, %v232_v4 }
 0x162   :  { %v267_v28 = vsel %vm239_vm0, %v266_v23, %v262_v24 }
 0x163   :  { %v316_v31 = vpop.permute.xlu1 %315  ;;  %v273_v32 = vsel %vm272_vm2, %v267_v28, %v271_v29 }
 0x164   :  { %v350_v35 = vrot.slane %v316_v31, %v232_v4  ;;  %v276_v36 = vsel %vm275_vm4, %v273_v32, 0.0 }
 0x165   :  { %277 = vadd.xlane.f32.xlu1 %v276_v36 }
 0x166   :  { %v355_v38 = vsel %vm239_vm0, %v354_v34, %v350_v35 }
 0x167   :  { %v358_v40 = vsel %vm272_vm2, %v355_v38, %v357_v39 }
 0x168   :  { %v360_v41 = vsel %vm275_vm4, %v358_v40, 0.0 }
 0x169   :  { %361 = vadd.xlane.f32.xlu0 %v360_v41 }
 0x1f2   :  { %v278_v42 = vpop.xlane.xlu1 %277 }
 0x1f3   :  { %v279_v44 = vmax.f32 %v278_v42, 0.0 }
 0x1f6   :  { %v362_v43 = vpop.xlane.xlu0 %361 }
 0x1f7   :  { %v363_v45 = vmax.f32 %v362_v43, 0.0 }
 0x1f9   :  { %v364_v47 = vadd.f32 %v363_v45, %v279_v44 }
 0x1fb   :  { %v371_v48 = vmul.f32 %v430_v46, %v364_v47 }
 0x1fd   :  { %v431_v49 = vmul.f32 -1.442695, %v371_v48 }
 0x1ff   :  { %442 = vpow2.f32 %v431_v49 }
 0x209   :  { %v443_v50 = vpop.eup %442 }
 0x20a   :  { %v375_v51 = vadd.f32 1.0, %v443_v50 }
 0x20c   :  { %444 = vrcp.f32 %v375_v51 }
 0x216   :  { %v445_v56 = vpop.eup %444 }
 0x217   :  { %v385_v57 = vrot.slane %v445_v56, %v384_v55 }
 0x219   :  { %v386_v58 = vcombine.high %v385_v57, %v385_v57  ;;  %v393_v59 = vrot.slane %v385_v57, %v384_v55 }
 0x21b   :  { %v400_v60 = vrot.slane %v386_v58, %v384_v55  ;;  %v401_v61 = vcombine.high %v393_v59, %v393_v59  ;;  %408 = vst.msk [vmem:[#allocation7] sm:$0x1] %vm407_vm5, %v393_v59 }
 0x21d   :  { %v402_v62 = vcombine.high %v400_v60, %v400_v60  ;;  %409 = vst.msk [vmem:[#allocation7 + $0x1] sm:$0x1] %vm407_vm5, %v400_v60  ;;  %410 = vst.msk [vmem:[#allocation7 + $0x2] sm:$0x1] %vm407_vm5, %v401_v61 }
 0x21f   :  { %411 = vst.msk [vmem:[#allocation7 + $0x3] sm:$0x1] %vm407_vm5, %v402_v62 }
 0x220   :  { %479 = shalt.err (!%p476_p12)
}
 0x221   :  { %s480_s5 = scalar_lea.hbm %s574_s3, 64 }
 0x222   :  { %p481_p13 = scmp.ne.s32.totalorder %s574_s3, %s480_s5  ;;  %p484_p0 = scmp.lt.u32.totalorder %s480_s5, %s574_s3 }
 0x224   :  { %p486_p1 = pnand %p484_p0, %p481_p13 }
 0x226   :  { %489 = shalt.err (!%p486_p1)
}
 0x227   :  { %s500_s10 = smov 16   ;;  %s501_s11 = smov 1  }
 0x228   :  { %423 = dma.vmem_to_hbm [thread:$0]  %s418_s29, 64, %s574_s3, [#allocation6], %s500_s10, %s500_s10, %s501_s11  }
 0x229   :  { %492 = dma.done.wait [#allocation6], 64  }
 0x22a   :  { %493 = vsyncadd [#allocation6], 4294967232 }
 0x22b   :  { %427 = vsyncpa [#allocation5], 1 }
 0x22c   :  { %428 = vsyncpa [#allocation6], 1 }

</bundles_post_ra>
